<compile_context>
chip_gen: v5e
topology: v5e:2x2
jax: 0.10.0
libtpu: 0.0.40
codegen_flags: <defaults>
</compile_context>

<pallas_src>
import functools

import jax
import jax.numpy as jnp
from jax.experimental import pallas as pl
from jax.experimental.pallas import tpu as pltpu

_SQRT_2_OVER_PI = 0.7978845608028654


def _gelu_new(x):
    # GPT-2 "gelu_new": 0.5*x*(1+tanh(sqrt(2/pi)*(x+0.044715*x^3))).
    return 0.5 * x * (1.0 + jnp.tanh(_SQRT_2_OVER_PI * (x + 0.044715 * x * x * x)))


def _round_up(x, m):
    return ((x + m - 1) // m) * m


# --------------------------------------------------------------------------- #
# Device / capability queries
# --------------------------------------------------------------------------- #

@functools.lru_cache(maxsize=None)
def _tpu_generation_and_vmem():
    """(generation string, per-core VMEM capacity bytes)."""
    kind = ""
    try:
        kind = (jax.devices()[0].device_kind or "").lower()
    except Exception:  # capability query only; never wraps the real kernel
        pass
    if "v7" in kind or "7x" in kind:
        gen, cap = "v7x", 64 << 20
    elif "v6" in kind:
        gen, cap = "v6e", 128 << 20
    elif "v5 lite" in kind or "v5lite" in kind or "v5e" in kind:
        gen, cap = "v5e", 128 << 20
    else:
        gen, cap = "unknown", 64 << 20          # conservative default
    try:
        cap = int(pltpu.get_tpu_info().vmem_capacity_bytes)
    except Exception:
        pass
    return gen, cap


_BUFFERED1_SUPPORTED = None


def _probe_kernel(x_ref, w_ref, o_ref):
    o_ref[...] = x_ref[...] + w_ref[...]


def _buffered1_supported():
    """One-time capability probe for pl.Buffered(1) single-buffered blocks."""
    global _BUFFERED1_SUPPORTED
    if _BUFFERED1_SUPPORTED is not None:
        return _BUFFERED1_SUPPORTED
    try:
        out = pl.pallas_call(
            _probe_kernel,
            out_shape=jax.ShapeDtypeStruct((16, 128), jnp.float32),
            grid=(2,),
            in_specs=[
                pl.BlockSpec((8, 128), lambda i: (i, 0)),
                pl.BlockSpec((8, 128), lambda i: (0, 0),
                             pipeline_mode=pl.Buffered(1)),
            ],
            out_specs=pl.BlockSpec((8, 128), lambda i: (i, 0)),
        )(jnp.zeros((16, 128), jnp.float32), jnp.ones((8, 128), jnp.float32))
        jax.block_until_ready(out)
        _BUFFERED1_SUPPORTED = bool(jnp.all(out == 1.0))
    except Exception:
        _BUFFERED1_SUPPORTED = False
    return _BUFFERED1_SUPPORTED


# --------------------------------------------------------------------------- #
# Kernel
# --------------------------------------------------------------------------- #

def _gpt2_mlp_kernel(x_ref, wfc_ref, bfc_ref, wproj_ref, bproj_ref, o_ref, acc_ref):
    j = pl.program_id(1)

    @pl.when(j == 0)
    def _init():
        acc_ref[...] = jnp.zeros_like(acc_ref)

    # c_fc for this intermediate block: cast the activation tile in-kernel (VPU),
    # so the wrapper never pays an extra HBM pass for dtype conversion.
    x = x_ref[...].astype(wfc_ref.dtype)
    h = jnp.dot(x, wfc_ref[...], preferred_element_type=jnp.float32)
    # bias add + gelu_new in the activation dtype (bf16 on v6e/v7x, f32 on v5e).
    h = h.astype(bfc_ref.dtype) + bfc_ref[...]
    g = _gelu_new(h).astype(wproj_ref.dtype)
    # c_proj partial product, accumulated in f32.
    acc_ref[...] += jnp.dot(g, wproj_ref[...], preferred_element_type=jnp.float32)

    @pl.when(j == pl.num_programs(1) - 1)
    def _finalize():
        # TODO(synk): dropout(resid_pdrop) is identity in eval mode; training-mode
        # dropout would use pltpu.prng_seed + pltpu.prng_random_bits here.
        o_ref[...] = (acc_ref[...] + bproj_ref[...]).astype(o_ref.dtype)


# --------------------------------------------------------------------------- #
# pallas_call construction
# --------------------------------------------------------------------------- #

def _footprint_bytes(tm, tI, n_j, H, in_isz, out_isz, w_isz, act_isz, single_buf_w):
    w_bufs = 1 if (n_j == 1 and single_buf_w) else 2
    weights = w_bufs * 2 * H * tI * w_isz          # W_fc col block + W_proj row block
    biases = 2 * tI * act_isz + 2 * H * 4
    x_tiles = 2 * tm * H * in_isz                  # double-buffered input tiles
    out_tiles = 2 * tm * H * out_isz
    acc = tm * H * 4                               # f32 accumulator scratch
    interm = 2 * tm * tI * max(act_isz, w_isz)     # live h / g slabs
    return weights + biases + x_tiles + out_tiles + acc + interm


def _build_call(M_pad, H, I, tm, tI, in_dtype, out_dtype, w_dtype, act_dtype,
                vmem_limit):
    n_i = M_pad // tm
    n_j = I // tI
    in_isz = jnp.dtype(in_dtype).itemsize
    out_isz = jnp.dtype(out_dtype).itemsize
    w_isz = jnp.dtype(w_dtype).itemsize
    act_isz = jnp.dtype(act_dtype).itemsize

    # When I is tiled, weight blocks are re-streamed once per row tile.
    w_reads = 1 if n_j == 1 else n_i
    cost = pl.CostEstimate(
        flops=4 * M_pad * H * I,
        transcendentals=M_pad * I,
        bytes_accessed=(M_pad * H * in_isz
                        + w_reads * 2 * H * I * w_isz
                        + I * act_isz + H * 4
                        + M_pad * H * out_isz))

    invariant_w = (n_j == 1)
    use_buf1 = _buffered1_supported()

    def wspec(shape, imap, invariant):
        if invariant and use_buf1:
            return pl.BlockSpec(shape, imap, pipeline_mode=pl.Buffered(1))
        return pl.BlockSpec(shape, imap)

    return pl.pallas_call(
        _gpt2_mlp_kernel,
        out_shape=jax.ShapeDtypeStruct((M_pad, H), out_dtype),
        grid_spec=pltpu.PrefetchScalarGridSpec(
            num_scalar_prefetch=0,
            grid=(n_i, n_j),
            in_specs=[
                pl.BlockSpec((tm, H), lambda i, j: (i, 0)),        # x row tile
                wspec((H, tI), lambda i, j: (0, j), invariant_w),  # W_fc column block
                wspec((1, tI), lambda i, j: (0, j), invariant_w),  # b_fc block
                wspec((tI, H), lambda i, j: (j, 0), invariant_w),  # W_proj row block
                wspec((1, H), lambda i, j: (0, 0), True),          # b_proj (invariant)
            ],
            out_specs=pl.BlockSpec((tm, H), lambda i, j: (i, 0)),
            scratch_shapes=[pltpu.VMEM((tm, H), jnp.float32)],
        ),
        compiler_params=pltpu.CompilerParams(
            # TODO(synk): on v7x verify the M axis shards across both TensorCores;
            # otherwise switch to pltpu.CORE_PARALLEL / pl.core_map.
            dimension_semantics=("parallel", "arbitrary"),
            vmem_limit_bytes=vmem_limit),
        cost_estimate=cost,
    )


# --------------------------------------------------------------------------- #
# Public wrapper
# --------------------------------------------------------------------------- #

def prepare_gpt2_mlp_weights(w_fc, w_proj, compute_dtype=jnp.bfloat16):
    """Cast Conv1D weights once; cache the result and pass it to gpt2_mlp so the
    per-call wrapper never pays an HBM round-trip for astype()."""
    return w_fc.astype(compute_dtype), w_proj.astype(compute_dtype)


def gpt2_mlp(hidden_states, w_fc, b_fc, w_proj, b_proj, *,
             tm=None, tile_i=None, compute_dtype=jnp.bfloat16, act_dtype=None):
    """GPT2MLP forward.

    hidden_states: [B, S, H]; w_fc: [H, I]; b_fc: [I]; w_proj: [I, H]; b_proj: [H].
    tm:        rows of B*S per grid step (default: 512 on v6e/v7x, 128 on v5e).
    tile_i:    intermediate-dim tile (default: auto; full I when it fits VMEM).
    compute_dtype: MXU input dtype (bf16 recommended; accumulation is always f32).
    act_dtype: dtype for bias+gelu math (default: compute_dtype, f32 on v5e).
    """
    B, S, H = hidden_states.shape
    I = w_fc.shape[1]
    M = B * S
    in_dtype = hidden_states.dtype
    out_dtype = hidden_states.dtype

    gen, vmem_cap = _tpu_generation_and_vmem()
    budget = max(vmem_cap - (8 << 20), 16 << 20)   # leave headroom below capacity

    compute_dtype = jnp.dtype(compute_dtype)
    if tm is None:
        tm = {"v5e": 128, "v6e": 512, "v7x": 512}.get(gen, 256)
    if act_dtype is None:
        act_dtype = jnp.float32 if gen == "v5e" else compute_dtype
    act_dtype = jnp.dtype(act_dtype)

    # Weights: ideally already cached in compute_dtype by the caller.
    w_fc_c = w_fc if w_fc.dtype == compute_dtype else w_fc.astype(compute_dtype)
    w_proj_c = w_proj if w_proj.dtype == compute_dtype else w_proj.astype(compute_dtype)
    b_fc2d = b_fc.reshape(1, I).astype(act_dtype)
    b_proj2d = b_proj.reshape(1, H).astype(jnp.float32)

    in_isz = jnp.dtype(in_dtype).itemsize
    out_isz = jnp.dtype(out_dtype).itemsize
    w_isz = compute_dtype.itemsize
    act_isz = act_dtype.itemsize

    sublane = max(8, 32 // min(in_isz, out_isz))
    tm_eff = max(sublane, min(int(tm), _round_up(M, sublane)))
    tm_eff = _round_up(tm_eff, sublane)
    single_buf_w = _buffered1_supported()

    if tile_i is not None:
        tI = int(tile_i)
        if I % tI != 0:
            raise ValueError(f"tile_i={tI} must divide intermediate size {I}")
    else:
        # Keep full weights resident when they fit; otherwise halve tI (multiples
        # of 128), then tm, until the VMEM footprint fits the generation budget.
        tI = I
        while True:
            n_j = I // tI
            fp = _footprint_bytes(tm_eff, tI, n_j, H, in_isz, out_isz,
                                  w_isz, act_isz, single_buf_w)
            if fp <= budget:
                break
            if tI % 2 == 0 and (tI // 2) % 128 == 0 and tI // 2 >= 512:
                tI //= 2
            elif tm_eff // 2 >= max(128, sublane):
                tm_eff = _round_up(tm_eff // 2, sublane)
            else:
                break   # best effort; vmem_limit below is still capacity-clamped

    n_j = I // tI
    M_pad = _round_up(M, tm_eff)
    fp = _footprint_bytes(tm_eff, tI, n_j, H, in_isz, out_isz,
                          w_isz, act_isz, single_buf_w)
    vmem_limit = int(min(max(fp + (8 << 20), 32 << 20), budget))

    x2d = hidden_states.reshape(M, H)              # no wrapper-side cast of x
    if M_pad != M:
        x2d = jnp.pad(x2d, ((0, M_pad - M), (0, 0)))

    out2d = _build_call(M_pad, H, I, tm_eff, tI, in_dtype, out_dtype,
                        compute_dtype, act_dtype, vmem_limit)(
        x2d, w_fc_c, b_fc2d, w_proj_c, b_proj2d)

    if M_pad != M:
        out2d = out2d[:M]
    return out2d.reshape(B, S, H)


def _reference(hidden_states, w_fc, b_fc, w_proj, b_proj):
    h = hidden_states @ w_fc + b_fc
    g = _gelu_new(h)
    return g @ w_proj + b_proj


if __name__ == "__main__":
    # Small shapes consistent with GPT2MLP: hidden_size=32, intermediate=4*hidden.
    B, S, H = 2, 8, 32
    I = 4 * H

    key = jax.random.PRNGKey(0)
    kx, kfc, kproj = jax.random.split(key, 3)

    x = jax.random.normal(kx, (B, S, H), dtype=jnp.float32)
    # Conv1D init: weight ~ N(0, 0.02), bias = 0
    w_fc = 0.02 * jax.random.normal(kfc, (H, I), dtype=jnp.float32)
    b_fc = jnp.zeros((I,), dtype=jnp.float32)
    w_proj = 0.02 * jax.random.normal(kproj, (I, H), dtype=jnp.float32)
    b_proj = jnp.zeros((H,), dtype=jnp.float32)

    ref = _reference(x, w_fc, b_fc, w_proj, b_proj)

    # 1) f32 MXU path (single row tile): tight check vs reference.
    out_f32 = jax.block_until_ready(
        gpt2_mlp(x, w_fc, b_fc, w_proj, b_proj, compute_dtype=jnp.float32))
    assert out_f32.shape == (B, S, H)
    assert jnp.allclose(out_f32, ref, atol=1e-5, rtol=1e-5), "f32 mismatch vs reference"

    # 2) f32 with a small row tile: exercises the M-grid pipeline.
    out_tiled = jax.block_until_ready(
        gpt2_mlp(x, w_fc, b_fc, w_proj, b_proj, tm=8, compute_dtype=jnp.float32))
    assert jnp.allclose(out_tiled, ref, atol=1e-5, rtol=1e-5), "tiled mismatch vs reference"

    # 3) f32 with forced intermediate-dim tiling: exercises the I-reduction /
    #    accumulator path used when weights do not fit VMEM (e.g. GPT-2 XL on v7x).
    H2, I2 = 64, 256
    x2 = jax.random.normal(kx, (B, S, H2), dtype=jnp.float32)
    w_fc2 = 0.02 * jax.random.normal(kfc, (H2, I2), dtype=jnp.float32)
    b_fc2 = 0.01 * jnp.ones((I2,), dtype=jnp.float32)
    w_proj2 = 0.02 * jax.random.normal(kproj, (I2, H2), dtype=jnp.float32)
    b_proj2 = 0.01 * jnp.ones((H2,), dtype=jnp.float32)
    ref2 = _reference(x2, w_fc2, b_fc2, w_proj2, b_proj2)
    out_itile = jax.block_until_ready(
        gpt2_mlp(x2, w_fc2, b_fc2, w_proj2, b_proj2, tile_i=128,
                 compute_dtype=jnp.float32))
    assert jnp.allclose(out_itile, ref2, atol=1e-5, rtol=1e-5), "I-tiled mismatch vs reference"

    # 4) Production config: bf16 MXU/act dtype, weights pre-cast ONCE by the caller.
    w_fc_bf16, w_proj_bf16 = prepare_gpt2_mlp_weights(w_fc, w_proj)
    out_bf16 = jax.block_until_ready(
        gpt2_mlp(x, w_fc_bf16, b_fc, w_proj_bf16, b_proj))
    assert out_bf16.shape == (B, S, H)
    assert jnp.allclose(out_bf16, ref, atol=1e-2, rtol=5e-2), "bf16 mismatch vs reference"

    print("KERNEL_OK")
</pallas_src>

<mosaic_0001>
module attributes {stable_mosaic.version = 11 : i64} {
  func.func @_probe_kernel(%arg0: i32, %arg1: memref<8x128xf32, #tpu.memory_space<vmem>>, %arg2: memref<8x128xf32, #tpu.memory_space<vmem>>, %arg3: memref<8x128xf32, #tpu.memory_space<vmem>>) attributes {dimension_semantics = [#tpu.dimension_semantics<arbitrary>], iteration_bounds = array<i64: 2>, scalar_prefetch = 0 : i64, scratch_operands = 0 : i64, tpu.core_type = #tpu.core_type<tc>, window_params = [{transform_indices = @transform_0, window_bounds = array<i64: 8, 128>}, {pipeline_mode = #tpu.pipeline_mode<synchronous>, transform_indices = @transform_1, window_bounds = array<i64: 8, 128>}, {transform_indices = @transform_2, window_bounds = array<i64: 8, 128>}]} {
    %c0 = arith.constant 0 : index
    %c0_0 = arith.constant 0 : index
    %0 = vector.load %arg1[%c0, %c0_0] : memref<8x128xf32, #tpu.memory_space<vmem>>, vector<8x128xf32>
    %c0_1 = arith.constant 0 : index
    %c0_2 = arith.constant 0 : index
    %1 = vector.load %arg2[%c0_1, %c0_2] : memref<8x128xf32, #tpu.memory_space<vmem>>, vector<8x128xf32>
    %2 = arith.addf %0, %1 : vector<8x128xf32>
    %c0_3 = arith.constant 0 : index
    %c0_4 = arith.constant 0 : index
    %3 = vector.load %arg3[%c0_3, %c0_4] : memref<8x128xf32, #tpu.memory_space<vmem>>, vector<8x128xf32>
    tpu.vector_store %arg3[%c0_3, %c0_4], %2 {strides = array<i32>} : memref<8x128xf32, #tpu.memory_space<vmem>>, vector<8x128xf32>,
    return
  }
  func.func @transform_0(%arg0: i32) -> (i32, i32) {
    %c0_i32 = arith.constant 0 : i32
    %c0_i32_0 = arith.constant 0 : i32
    return %arg0, %c0_i32 : i32, i32
  }
  func.func @transform_1(%arg0: i32) -> (i32, i32) {
    %c0_i32 = arith.constant 0 : i32
    %c0_i32_0 = arith.constant 0 : i32
    %c0_i32_1 = arith.constant 0 : i32
    return %c0_i32, %c0_i32_0 : i32, i32
  }
  func.func @transform_2(%arg0: i32) -> (i32, i32) {
    %c0_i32 = arith.constant 0 : i32
    %c0_i32_0 = arith.constant 0 : i32
    return %arg0, %c0_i32 : i32, i32
  }
}

module attributes {stable_mosaic.version = 11 : i64} {
  func.func @_gpt2_mlp_kernel(%arg0: i32, %arg1: i32, %arg2: memref<16x32xf32, #tpu.memory_space<vmem>>, %arg3: memref<32x128xf32, #tpu.memory_space<vmem>>, %arg4: memref<1x128xf32, #tpu.memory_space<vmem>>, %arg5: memref<128x32xf32, #tpu.memory_space<vmem>>, %arg6: memref<1x32xf32, #tpu.memory_space<vmem>>, %arg7: memref<16x32xf32, #tpu.memory_space<vmem>>, %arg8: memref<16x32xf32, #tpu.memory_space<vmem>>) attributes {dimension_semantics = [#tpu.dimension_semantics<parallel>, #tpu.dimension_semantics<arbitrary>], iteration_bounds = array<i64: 1, 1>, scalar_prefetch = 0 : i64, scratch_operands = 1 : i64, tpu.core_type = #tpu.core_type<tc>, window_params = [{transform_indices = @transform_0, window_bounds = array<i64: 16, 32>}, {transform_indices = @transform_1, window_bounds = array<i64: 32, 128>}, {transform_indices = @transform_2, window_bounds = array<i64: 1, 128>}, {transform_indices = @transform_3, window_bounds = array<i64: 128, 32>}, {pipeline_mode = #tpu.pipeline_mode<synchronous>, transform_indices = @transform_4, window_bounds = array<i64: 1, 32>}, {transform_indices = @transform_5, window_bounds = array<i64: 16, 32>}]} {
    %c0_i32 = arith.constant 0 : i32
    %0 = arith.cmpi eq, %arg1, %c0_i32 : i32
    %1 = arith.extui %0 : i1 to i32
    %c0_i32_0 = arith.constant 0 : i32
    %2 = arith.cmpi ne, %1, %c0_i32_0 : i32
    scf.if %2 {
      %cst_19 = arith.constant 0.000000e+00 : f32
      %30 = vector.broadcast %cst_19 : f32 to vector<16x32xf32>
      %c0_20 = arith.constant 0 : index
      %c0_21 = arith.constant 0 : index
      %31 = vector.load %arg8[%c0_20, %c0_21] : memref<16x32xf32, #tpu.memory_space<vmem>>, vector<16x32xf32>
      tpu.vector_store %arg8[%c0_20, %c0_21], %30 {strides = array<i32>} : memref<16x32xf32, #tpu.memory_space<vmem>>, vector<16x32xf32>,
    } else {
    }
    %c0 = arith.constant 0 : index
    %c0_1 = arith.constant 0 : index
    %3 = vector.load %arg2[%c0, %c0_1] : memref<16x32xf32, #tpu.memory_space<vmem>>, vector<16x32xf32>
    %c0_2 = arith.constant 0 : index
    %c0_3 = arith.constant 0 : index
    %4 = vector.load %arg3[%c0_2, %c0_3] : memref<32x128xf32, #tpu.memory_space<vmem>>, vector<32x128xf32>
    %cst = arith.constant dense<0.000000e+00> : vector<16x128xf32>
    %5 = tpu.matmul %3, %4, %cst {dimension_numbers = #tpu.dot_dimension_numbers<[1], [0], [0], [1], [0, 0, 1, 1], [], []>} : vector<16x32xf32>, vector<32x128xf32>, vector<16x128xf32> -> vector<16x128xf32>
    %c0_4 = arith.constant 0 : index
    %c0_5 = arith.constant 0 : index
    %6 = vector.load %arg4[%c0_4, %c0_5] : memref<1x128xf32, #tpu.memory_space<vmem>>, vector<1x128xf32>
    %7 = vector.broadcast %6 : vector<1x128xf32> to vector<16x128xf32>
    %8 = arith.addf %5, %7 : vector<16x128xf32>
    %cst_6 = arith.constant 5.000000e-01 : f32
    %9 = vector.broadcast %cst_6 : f32 to vector<16x128xf32>
    %10 = arith.mulf %9, %8 : vector<16x128xf32>
    %cst_7 = arith.constant 4.471500e-02 : f32
    %11 = vector.broadcast %cst_7 : f32 to vector<16x128xf32>
    %12 = arith.mulf %11, %8 : vector<16x128xf32>
    %13 = arith.mulf %12, %8 : vector<16x128xf32>
    %14 = arith.mulf %13, %8 : vector<16x128xf32>
    %15 = arith.addf %8, %14 : vector<16x128xf32>
    %cst_8 = arith.constant 0.797884583 : f32
    %16 = vector.broadcast %cst_8 : f32 to vector<16x128xf32>
    %17 = arith.mulf %16, %15 : vector<16x128xf32>
    %18 = math.tanh %17 : vector<16x128xf32>
    %cst_9 = arith.constant 1.000000e+00 : f32
    %19 = vector.broadcast %cst_9 : f32 to vector<16x128xf32>
    %20 = arith.addf %19, %18 : vector<16x128xf32>
    %21 = arith.mulf %10, %20 : vector<16x128xf32>
    %c0_10 = arith.constant 0 : index
    %c0_11 = arith.constant 0 : index
    %22 = vector.load %arg8[%c0_10, %c0_11] : memref<16x32xf32, #tpu.memory_space<vmem>>, vector<16x32xf32>
    %c0_12 = arith.constant 0 : index
    %c0_13 = arith.constant 0 : index
    %23 = vector.load %arg5[%c0_12, %c0_13] : memref<128x32xf32, #tpu.memory_space<vmem>>, vector<128x32xf32>
    %cst_14 = arith.constant dense<0.000000e+00> : vector<16x32xf32>
    %24 = tpu.matmul %21, %23, %cst_14 {dimension_numbers = #tpu.dot_dimension_numbers<[1], [0], [0], [1], [0, 0, 1, 1], [], []>} : vector<16x128xf32>, vector<128x32xf32>, vector<16x32xf32> -> vector<16x32xf32>
    %25 = arith.addf %22, %24 : vector<16x32xf32>
    %c0_15 = arith.constant 0 : index
    %c0_16 = arith.constant 0 : index
    %26 = vector.load %arg8[%c0_15, %c0_16] : memref<16x32xf32, #tpu.memory_space<vmem>>, vector<16x32xf32>
    tpu.vector_store %arg8[%c0_15, %c0_16], %25 {strides = array<i32>} : memref<16x32xf32, #tpu.memory_space<vmem>>, vector<16x32xf32>,
    %c0_i32_17 = arith.constant 0 : i32
    %27 = arith.cmpi eq, %arg1, %c0_i32_17 : i32
    %28 = arith.extui %27 : i1 to i32
    %c0_i32_18 = arith.constant 0 : i32
    %29 = arith.cmpi ne, %28, %c0_i32_18 : i32
    scf.if %29 {
      %c0_19 = arith.constant 0 : index
      %c0_20 = arith.constant 0 : index
      %30 = vector.load %arg8[%c0_19, %c0_20] : memref<16x32xf32, #tpu.memory_space<vmem>>, vector<16x32xf32>
      %c0_21 = arith.constant 0 : index
      %c0_22 = arith.constant 0 : index
      %31 = vector.load %arg6[%c0_21, %c0_22] : memref<1x32xf32, #tpu.memory_space<vmem>>, vector<1x32xf32>
      %32 = vector.broadcast %31 : vector<1x32xf32> to vector<16x32xf32>
      %33 = arith.addf %30, %32 : vector<16x32xf32>
      %c0_23 = arith.constant 0 : index
      %c0_24 = arith.constant 0 : index
      %34 = vector.load %arg7[%c0_23, %c0_24] : memref<16x32xf32, #tpu.memory_space<vmem>>, vector<16x32xf32>
      tpu.vector_store %arg7[%c0_23, %c0_24], %33 {strides = array<i32>} : memref<16x32xf32, #tpu.memory_space<vmem>>, vector<16x32xf32>,
    } else {
    }
    return
  }
  func.func @transform_0(%arg0: i32, %arg1: i32) -> (i32, i32) {
    %c0_i32 = arith.constant 0 : i32
    %c0_i32_0 = arith.constant 0 : i32
    return %arg0, %c0_i32 : i32, i32
  }
  func.func @transform_1(%arg0: i32, %arg1: i32) -> (i32, i32) {
    %c0_i32 = arith.constant 0 : i32
    %c0_i32_0 = arith.constant 0 : i32
    return %c0_i32, %arg1 : i32, i32
  }
  func.func @transform_2(%arg0: i32, %arg1: i32) -> (i32, i32) {
    %c0_i32 = arith.constant 0 : i32
    %c0_i32_0 = arith.constant 0 : i32
    return %c0_i32, %arg1 : i32, i32
  }
  func.func @transform_3(%arg0: i32, %arg1: i32) -> (i32, i32) {
    %c0_i32 = arith.constant 0 : i32
    %c0_i32_0 = arith.constant 0 : i32
    return %arg1, %c0_i32 : i32, i32
  }
  func.func @transform_4(%arg0: i32, %arg1: i32) -> (i32, i32) {
    %c0_i32 = arith.constant 0 : i32
    %c0_i32_0 = arith.constant 0 : i32
    %c0_i32_1 = arith.constant 0 : i32
    return %c0_i32, %c0_i32_0 : i32, i32
  }
  func.func @transform_5(%arg0: i32, %arg1: i32) -> (i32, i32) {
    %c0_i32 = arith.constant 0 : i32
    %c0_i32_0 = arith.constant 0 : i32
    return %arg0, %c0_i32 : i32, i32
  }
}

</mosaic_0001>

<bundles_post_ra>
// kernel: tpu_custom_call.1
= control target key start
LH: loop header
LB: loop body
LE: loop exit
PB: predicated region body
PF: predicated region fallthrough
CT: control target
= control target key end

     0   :  { %7 = vsyncpa [#allocation3], 0  ;;  %s633_s0 = inlined_call_operand.hbm [shape: f32[16,128], index: 0, kind: input, shape index: {}]   ;;  %s634_s1 = inlined_call_operand.hbm [shape: f32[8,128], index: 1, kind: input, shape index: {}]   ;;  %s635_s2 = inlined_call_operand.hbm [shape: f32[16,128], index: 2, kind: output, shape index: {}]  }
   0x1   :  { %9 = vsyncpa [#allocation3 + $0x1], 0 }
   0x2   :  { %10 = vsyncpa [#allocation6], 0 }
   0x3   :  { %11 = vsyncpa [#allocation4], 0 }
   0x4   :  { %13 = vsyncpa [#allocation4 + $0x1], 0  ;;  %s495_s9 = smov 0   ;;  %s497_s10 = smov 0  }
   0x5   :  { %s499_s11 = smov 0   ;;  %s501_s12 = smov 0  }
   0x6 LB: > { %s516_s13 = sadd.s32 4294967295, %s477_s12   ;;  %s276_s14 = sadd.s32 4294967294, %s477_s12   ;;  %s477_s12 = sphi %s501_s12, %s645_s12   ;;  %s473_s11 = sphi %s499_s11, %s644_s11   ;;  %s469_s10 = sphi %s497_s10, %s643_s10   ;;  %s465_s9 = sphi %s495_s9, %s642_s9  }
   0x7   : > { %p39_p0 = scmp.ne.s32.totalorder %s469_s10, %s465_s9  ;;  %p40_p1 = scmp.eq.s32.totalorder %s516_s13, 0 }
   0x8   : > { %p84_p2 = scmp.eq.s32.totalorder %s516_s13, 1  ;;  %p90_p3 = scmp.eq.s32.totalorder %s276_s14, 1 }
   0x9   : > { %p525_p4 = por %p40_p1, %p39_p0  ;;  %p277_p5 = scmp.ge.s32.totalorder %s477_s12, 1 }
   0xa   : > { %p530_p6 = por %p90_p3, %p39_p0  ;;  %p97_p7 = scmp.lt.s32.totalorder %s477_s12, 3 }
   0xb   : > { %s109_s19 = sshll.u32 %s634_s1, 4  ;;  %s479_s21 = smov [#allocation5]   ;;  %s110_s19 = int_to_ptr.hbm [resolvable:$true] %s109_s19 }
   0xc   : > { %p538_p8 = pnand %p277_p5, %p97_p7  ;;  %s111_s22 = sshll.u32 %s479_s21, 4  ;;  %s112_s22 = int_to_ptr.vmem [resolvable:$true] %s111_s22 }
   0xd   : > { %s548_s23 = sadd.s32 1, %s477_s12   ;;  %s26_s24 = sadd.s32 1, %s473_s11 }
   0xe   : > { %p298_p10 = pneg %p538_p8  ;;  %s23_s25 = ssub.s32 %s477_s12, %s548_s23 }
   0xf   : > { %p24_p12 = scmp.eq.s32.totalorder %s23_s25, 0  ;;  %p33_p13 = scmp.ne.s32.totalorder %s473_s11, %s469_s10 }
  0x10   : > { %p299_p11 = pnand %p298_p10, %p40_p1  ;;  %p34_p0 = scmp.eq.s32.totalorder %s477_s12, 0 }
  0x11   : > { %s557_s26 = scalar_select %p24_p12, %s473_s11, %s26_s24  }
  0x12   : > { %301 = dma.hbm_to_vmem [thread:$0]  (!%p299_p11), %s110_s19, 128, %s112_s22, [#allocation6]  }
  0x13   : > { %p561_p3 = por %p84_p2, %p33_p13  ;;  %p311_p5 = scmp.lt.s32.totalorder %s477_s12, 2 }
  0x14   : > { %s122_s28 = sand.u32 1, %s473_s11   ;;  %s281_s29 = sshll.u32 %s477_s12, 3 }
  0x15   : > { %p35_p7 = por %p34_p0, %p33_p13  ;;  %s280_s30 = sshll.u32 %s122_s28, 3 }
  0x16   : > { %s130_s5 = scalar_lea.hbm %s633_s0, %s281_s29  ;;  %s126_s7 = scalar_lea.vmem [#allocation2], %s280_s30 }
  0x17   : > { %s132_s6 = sshll.u32 %s130_s5, 4  ;;  %s134_s8 = sshll.u32 %s126_s7, 4  ;;  %s133_s6 = int_to_ptr.hbm [resolvable:$true] %s132_s6  ;;  %s135_s8 = int_to_ptr.vmem [resolvable:$true] %s134_s8 }
  0x18   : > { %p571_p10 = pnand %p311_p5, %p35_p7  ;;  %s123_s17 = scalar_lea.sflag [#allocation3], %s122_s28 }
  0x19   : > { %s377_s18 = sshra.s32 %s133_s6, 4  ;;  %s384_s24 = scalar_lea.hbm %s633_s0, 16  ;;  %s378_s18 = int_to_ptr.hbm [resolvable:$true] %s377_s18 }
  0x1a   : > { %s379_s19 = scalar_lea.hbm %s378_s18, 8  ;;  %p381_p11 = pneg %p571_p10 }
  0x1b   : > { %p380_p2 = scmp.ne.s32.totalorder %s378_s18, %s379_s19  ;;  %p385_p0 = scmp.lt.s32.totalorder %s378_s18, %s633_s0 }
  0x1c   : > { %p386_p5 = scmp.lt.s32.totalorder %s384_s24, %s379_s19 }
  0x1d   : > { %p382_p12 = pnand %p381_p11, %p380_p2 }
  0x1e   : > { %p387_p7 = por %p386_p5, %p385_p0 }
  0x1f   : > { %p383_p13 = pneg %p382_p12 }
  0x21   : > { %p388_p9 = pnand %p387_p7, %p383_p13 }
  0x23   : > { %391 = shalt.err (!%p388_p9)
}
  0x24   : > { %305 = dma.hbm_to_vmem [thread:$0]  (!%p571_p10), %s133_s6, 128, %s135_s8, %s123_s17  }
  0x25   : > { %143 = sbr.rel (%p538_p8) target bundleno = 60 (0x3c), region = 28  ;;  %s588_s28 = sand.u32 (!%p538_p8), 1, %s469_s10  }
  0x26   : > { %s283_s30 = sshll.u32 (!%p538_p8), %s588_s28, 3  ;;  %s146_s3 = scalar_lea.sflag (!%p538_p8), [#allocation3], %s588_s28 }
  0x27   : > { %s149_s4 = scalar_lea.vmem (!%p538_p8), [#allocation2], %s283_s30 }
  0x2a   : > { %452 = dma.done.wait (%p525_p4), %s146_s3, 128  }
  0x2b   : > { %454 = vsyncadd (%p525_p4), %s146_s3, 4294967168 }
  0x2c   : > { %456 = dma.done.wait (%p40_p1), [#allocation6], 128  }
  0x2d   : > { %458 = vsyncadd (%p40_p1), [#allocation6], 4294967168  ;;  %s287_s20 = sshll.u32 %s516_s13, 3  ;;  %s175_s8 = scalar_lea.vmem [#allocation7], %s283_s30  ;;  %v176_v0 = vld [vmem:[%s149_s4] sm:$0xff]  ;;  %v177_v1 = vld [vmem:[#allocation5] sm:$0xff] }
  0x2e   : > { %s191_s7 = scalar_lea.hbm %s635_s2, %s287_s20  ;;  %s193_s14 = sshll.u32 %s175_s8, 4  ;;  %v178_v2 = vadd.f32 %v177_v1, %v176_v0  ;;  %s194_s14 = int_to_ptr.vmem [resolvable:$true] %s193_s14 }
  0x2f   : > { %s195_s17 = sshll.u32 %s191_s7, 4  ;;  %s181_s15 = scalar_lea.sflag [#allocation4], %s588_s28  ;;  %s196_s17 = int_to_ptr.hbm [resolvable:$true] %s195_s17 }
  0x30   : > { %179 = vst [vmem:[%s175_s8] sm:$0xff] %v178_v2  ;;  %s421_s18 = sshra.s32 %s196_s17, 4  ;;  %s427_s22 = scalar_lea.hbm %s635_s2, 16  ;;  %s422_s18 = int_to_ptr.hbm [resolvable:$true] %s421_s18 }
  0x31   : > { %s423_s19 = scalar_lea.hbm %s422_s18, 8  ;;  %p428_p9 = scmp.lt.s32.totalorder %s422_s18, %s635_s2 }
  0x32   : > { %p424_p1 = scmp.ne.s32.totalorder %s422_s18, %s423_s19  ;;  %p429_p10 = scmp.lt.s32.totalorder %s427_s22, %s423_s19 }
  0x34   : > { %p425_p4 = pnand %p424_p1, %p561_p3  ;;  %p430_p2 = por %p429_p10, %p428_p9 }
  0x36   : > { %p426_p8 = pneg %p425_p4 }
  0x38   : > { %p431_p11 = pnand %p430_p2, %p426_p8 }
  0x3a   : > { %434 = shalt.err (!%p431_p11)
}
  0x3b   : > { %296 = dma.vmem_to_hbm [thread:$0]  (%p561_p3), %s194_s14, 128, %s196_s17, %s181_s15  }
  0x3c PF: > { %s207_s29 = sand.u32 1, %s465_s9   ;;  %p641_p12 = scmp.ge.s32.totalorder %s477_s12, 2 }
  0x3d   : > { %s208_s28 = scalar_lea.sflag [#allocation4], %s207_s29 }
  0x3e   : > { %p307_p13 = pnand %p641_p12, %p530_p6 }
  0x40   : > { %p308_p0 = pneg %p307_p13 }
  0x42   : > { %460 = dma.done.wait (%p308_p0), %s208_s28, 128  }
  0x43   : > { %462 = vsyncadd (%p308_p0), %s208_s28, 4294967168  ;;  %p16_p5 = scmp.ge.s32.totalorder %s548_s23, 4   ;;  %s642_s9 = smov %s469_s10 }
  0x44   : > { %s643_s10 = smov %s473_s11  ;;  %s644_s11 = smov %s557_s26 }
  0x45   : > { %s645_s12 = smov %s548_s23  ;;  %18 = sbr.rel (!%p16_p5) target bundleno = 6 (0x6), region = 77 }
  0x4a   :  { %214 = vsyncpa [#allocation3], 1 }
  0x4b   :  { %216 = vsyncpa [#allocation3 + $0x1], 1 }
  0x4c   :  { %217 = vsyncpa [#allocation6], 1 }
  0x4d   :  { %218 = vsyncpa [#allocation4], 1 }
  0x4e   :  { %220 = vsyncpa [#allocation4 + $0x1], 1 }

// kernel: tpu_custom_call.1
= control target key start
LH: loop header
LB: loop body
LE: loop exit
PB: predicated region body
PF: predicated region fallthrough
CT: control target
= control target key end

     0   :  { %s333_s0 = inlined_call_operand.vmem [shape: f32[16,32], index: 0, kind: input, shape index: {}]   ;;  %s334_s1 = inlined_call_operand.vmem [shape: f32[32,128], index: 1, kind: input, shape index: {}]   ;;  %s335_s2 = inlined_call_operand.vmem [shape: f32[1,128], index: 2, kind: input, shape index: {}]   ;;  %s336_s3 = inlined_call_operand.vmem [shape: f32[128,32], index: 3, kind: input, shape index: {}]   ;;  %s337_s4 = inlined_call_operand.vmem [shape: f32[1,32], index: 4, kind: input, shape index: {}]   ;;  %s338_s5 = inlined_call_operand.hbm [shape: f32[16,32], index: 5, kind: output, shape index: {}]  }
   0x1   :  { %v33_v0 = vld [vmem:[%s334_s1 + $0x18] sm:$0xff]  ;;  %v32_v1 = vld [vmem:[%s334_s1 + $0x10] sm:$0xff]  ;;  %v31_v2 = vld [vmem:[%s334_s1 + $0x8] sm:$0xff] }
   0x2   :  { %57 = vmatpush.msra.mxu0 %v33_v0  ;;  %v103_v3 = vld [vmem:[%s336_s3 + $0x78] sm:$0xff]  ;;  %v102_v4 = vld [vmem:[%s336_s3 + $0x70] sm:$0xff]  ;;  %v30_v5 = vld [vmem:[%s334_s1] sm:$0xff] }
   0x3   :  { %104 = vmatpush.msra.mxu1 %v103_v3  ;;  %v101_v6 = vld [vmem:[%s336_s3 + $0x68] sm:$0xff]  ;;  %164 = vmatpush.msra.mxu2 %v103_v3 }
   0x4   :  { %58 = vmatpush.msra.mxu0 %v32_v1 }
   0x5   :  { %10 = vsyncpa [#allocation4], 0  ;;  %vm25_vm0 = vcmask 261120   ;;  %v28_v7 = vld [vmem:[%s333_s0] sm:$0xff]  ;;  %105 = vmatpush.msra.mxu1 %v102_v4  ;;  %165 = vmatpush.msra.mxu2 %v102_v4  ;;  %v29_v9 = vld [vmem:[%s333_s0 + $0x8] sm:$0xff]  ;;  %v216_v25 = vmov 0.0  }
   0x6   :  { %59 = vmatpush.msra.mxu0 %v31_v2  ;;  %v100_v8 = vld [vmem:[%s336_s3 + $0x60] sm:$0xff]  ;;  %v99_v10 = vld [vmem:[%s336_s3 + $0x58] sm:$0xff]  ;;  %v98_v11 = vld [vmem:[%s336_s3 + $0x50] sm:$0xff]  ;;  %26 = vst.msk [vmem:[#allocation2] sm:$0xff] %vm25_vm0, %v216_v25  ;;  %s217_s11 = smov [#allocation3]   ;;  %s150_s15 = sshll.u32 %s338_s5, 4  ;;  %s151_s15 = int_to_ptr.hbm [resolvable:$true] %s150_s15 }
   0x7   :  { %106 = vmatpush.msra.mxu1 %v101_v6  ;;  %166 = vmatpush.msra.mxu2 %v101_v6  ;;  %v97_v12 = vld [vmem:[%s336_s3 + $0x48] sm:$0xff]  ;;  %v96_v13 = vld [vmem:[%s336_s3 + $0x40] sm:$0xff]  ;;  %v95_v14 = vld [vmem:[%s336_s3 + $0x38] sm:$0xff]  ;;  %27 = vst.msk [vmem:[#allocation2 + $0x8] sm:$0xff] %vm25_vm0, %v216_v25  ;;  %s148_s12 = sshll.u32 %s217_s11, 4  ;;  %s219_s16 = smov 8   ;;  %s149_s12 = int_to_ptr.vmem [resolvable:$true] %s148_s12 }
   0x8   :  { %60 = vmatpush.msra.mxu0 %v30_v5  ;;  %v94_v15 = vld [vmem:[%s336_s3 + $0x30] sm:$0xff]  ;;  %v93_v16 = vld [vmem:[%s336_s3 + $0x28] sm:$0xff]  ;;  %v92_v17 = vld [vmem:[%s336_s3 + $0x20] sm:$0xff] }
   0x9   :  { %162 = vmatmul.msk.f32.vlgmr.msra.gmra.mxu0 %vm25_vm0, %v28_v7  ;;  %107 = vmatpush.msra.mxu1 %v100_v8  ;;  %v91_v18 = vld [vmem:[%s336_s3 + $0x18] sm:$0xff]  ;;  %v90_v19 = vld [vmem:[%s336_s3 + $0x10] sm:$0xff]  ;;  %v89_v20 = vld [vmem:[%s336_s3 + $0x8] sm:$0xff] }
   0xa   :  { %167 = vmatpush.msra.mxu2 %v100_v8  ;;  %v88_v21 = vld [vmem:[%s336_s3] sm:$0xff] }
   0xb   :  { %108 = vmatpush.msra.mxu1 %v99_v10  ;;  %v184_v22 = vld [vmem:[%s335_s2] ss:$0 sm:$0xff] }
   0xc   :  { %168 = vmatpush.msra.mxu2 %v99_v10  ;;  %v185_v49 = vld [vmem:[%s337_s4] ss:$0 sm:$0xff]  ;;  %s218_s4 = smov 128  }
   0xd   :  { %109 = vmatpush.msra.mxu1 %v98_v11  ;;  %v86_v46 = vld [vmem:[#allocation2] sm:$0xff] }
   0xe   :  { %169 = vmatpush.msra.mxu2 %v98_v11  ;;  %v87_v52 = vld [vmem:[#allocation2 + $0x8] sm:$0xff] }
   0xf   :  { %110 = vmatpush.msra.mxu1 %v97_v12 }
  0x10   :  { %170 = vmatpush.msra.mxu2 %v97_v12 }
  0x11   :  { %163 = vmatmul.msk.f32.gmra.mxu0 %vm25_vm0, %v29_v9  ;;  %111 = vmatpush.msra.mxu1 %v96_v13 }
  0x12   :  { %171 = vmatpush.msra.mxu2 %v96_v13 }
  0x13   :  { %112 = vmatpush.msra.mxu1 %v95_v14 }
  0x14   :  { %172 = vmatpush.msra.mxu2 %v95_v14 }
  0x15   :  { %113 = vmatpush.msra.mxu1 %v94_v15 }
  0x16   :  { %173 = vmatpush.msra.mxu2 %v94_v15 }
  0x17   :  { %114 = vmatpush.msra.mxu1 %v93_v16 }
  0x18   :  { %174 = vmatpush.msra.mxu2 %v93_v16 }
  0x19   :  { %115 = vmatpush.msra.mxu1 %v92_v17 }
  0x1a   :  { %175 = vmatpush.msra.mxu2 %v92_v17 }
  0x1b   :  { %116 = vmatpush.msra.mxu1 %v91_v18 }
  0x1c   :  { %176 = vmatpush.msra.mxu2 %v91_v18 }
  0x1d   :  { %117 = vmatpush.msra.mxu1 %v90_v19 }
  0x1e   :  { %177 = vmatpush.msra.mxu2 %v90_v19 }
  0x1f   :  { %118 = vmatpush.msra.mxu1 %v89_v20 }
  0x20   :  { %178 = vmatpush.msra.mxu2 %v89_v20 }
  0x21   :  { %119 = vmatpush.msra.mxu1 %v88_v21 }
  0x22   :  { %179 = vmatpush.msra.mxu2 %v88_v21 }
  0x86   :  { %v62_v23 = vpop.f32.mrf.mxu0 }
  0x87   :  { %v63_v24 = vadd.f32 %v184_v22, %v62_v23 }
  0x89   :  { %v70_v26 = vmul.f32 0.044715, %v63_v24  ;;  %v68_v39 = vmul.f32 0.5, %v63_v24 }
  0x8b   :  { %v72_v27 = vmul.f32 %v70_v26, %v63_v24 }
  0x8d   :  { %v74_v28 = vmul.f32 %v72_v27, %v63_v24 }
  0x8e   :  { %v65_v29 = vpop.f32.mrf.mxu0 }
  0x8f   :  { %v66_v30 = vadd.f32 %v184_v22, %v65_v29  ;;  %v76_v31 = vadd.f32 %v74_v28, %v63_v24 }
  0x91   :  { %v78_v32 = vmul.f32 0.7978846, %v76_v31  ;;  %v71_v33 = vmul.f32 0.044715, %v66_v30  ;;  %v69_v43 = vmul.f32 0.5, %v66_v30 }
  0x93   :  { %186 = vtanh.f32 %v78_v32  ;;  %v73_v34 = vmul.f32 %v71_v33, %v66_v30 }
  0x95   :  { %v75_v35 = vmul.f32 %v73_v34, %v66_v30 }
  0x97   :  { %v77_v36 = vadd.f32 %v75_v35, %v66_v30 }
  0x99   :  { %v187_v37 = vpop.eup %186  ;;  %v79_v38 = vmul.f32 0.7978846, %v77_v36 }
  0x9a   :  { %v82_v40 = vadd.f32 1.0, %v187_v37 }
  0x9b   :  { %188 = vtanh.f32 %v79_v38 }
  0x9c   :  { %v84_v41 = vmul.f32 %v82_v40, %v68_v39 }
  0x9e   :  { %120 = vmatmul.f32.vlgmr.msra.gmra.mxu1 %v84_v41 }
  0xa1   :  { %v189_v42 = vpop.eup %188 }
  0xa2   :  { %v83_v44 = vadd.f32 1.0, %v189_v42 }
  0xa4   :  { %v85_v45 = vmul.f32 %v83_v44, %v69_v43 }
  0xa6   :  { %123 = vmatmul.f32.vlgmr.msra.gmra.mxu2 %v85_v45 }
 0x11b   :  { %v121_v47 = vpop.f32.mrf.mxu1 }
 0x11c   :  { %v127_v48 = vadd.f32 %v121_v47, %v86_v46 }
 0x11e   :  { %129 = vst.msk [vmem:[#allocation2] sm:$0xff] %vm25_vm0, %v127_v48 }
 0x125   :  { %v134_v50 = vld [vmem:[#allocation2] sm:$0xff] }
 0x126   :  { %v140_v51 = vadd.f32 %v185_v49, %v134_v50 }
 0x128   :  { %142 = vst.msk [vmem:[#allocation3] sm:$0xff] %vm25_vm0, %v140_v51 }
 0x129   :  { %v124_v53 = vpop.f32.mrf.mxu2 }
 0x12a   :  { %v128_v54 = vadd.f32 %v124_v53, %v87_v52 }
 0x12c   :  { %130 = vst.msk [vmem:[#allocation2 + $0x8] sm:$0xff] %vm25_vm0, %v128_v54 }
 0x133   :  { %v135_v55 = vld [vmem:[#allocation2 + $0x8] sm:$0xff] }
 0x134   :  { %v141_v56 = vadd.f32 %v185_v49, %v135_v55 }
 0x136   :  { %143 = vst.msk [vmem:[#allocation3 + $0x8] sm:$0xff] %vm25_vm0, %v141_v56 }
 0x137   :  { %156 = dma.vmem_to_hbm [thread:$0]  %s149_s12, 256, %s151_s15, [#allocation4], %s218_s4, %s218_s4, %s219_s16  }
 0x138   :  { %214 = dma.done.wait [#allocation4], 256  }
 0x139   :  { %215 = vsyncadd [#allocation4], 4294967040 }
 0x13a   :  { %161 = vsyncpa [#allocation4], 1 }

</bundles_post_ra>
